<compile_context>
chip_gen: v6e
topology: v6e:2x2x1
jax: 0.10.0
libtpu: 0.0.40
codegen_flags: <defaults>
</compile_context>

<pallas_src>
import functools

import jax
import jax.numpy as jnp
from jax.experimental import pallas as pl
from jax.experimental.pallas import tpu as pltpu


def _round_up(v: int, m: int) -> int:
    return -(-v // m) * m


# ----------------------------------------------------------------------------
# Pallas kernel: one (batch, HW-tile) step, fully fused Decoder forward
# ----------------------------------------------------------------------------
def _decoder_kernel(x_ref, w_ref, b_ref, o_ref, *, F_pad, C_pad, F_out, C_in):
    # x_ref : (1, C_in, T)                 channels on sublanes, pixels on lanes
    # w_ref : (2*(F_pad+C_pad), C_in)      packed [lin_w ; w1 ; w2 ; w3] rows,
    #                                      zero-padded to 8-row boundaries
    # b_ref : (2*(F_pad+C_pad), 1) f32     packed biases, same row layout
    # o_ref : (1, F_out, T)
    x = x_ref[0]                                           # (C_in, T) native dtype
    r0 = F_pad + C_pad

    # Stage A: one MXU pass over x computes BOTH the linear branch and conv1.
    ya = jnp.dot(w_ref[0:r0, :], x,
                 preferred_element_type=jnp.float32) + b_ref[0:r0, :]   # (r0, T)
    y = ya[0:F_out, :]                                     # linear branch (F, T)
    h = jnp.maximum(ya[F_pad:F_pad + C_in, :], 0.0)        # relu(conv1(x)) (C, T)

    # Stage B: conv2 -> relu
    h = jnp.dot(w_ref[r0:r0 + C_in, :], h.astype(x.dtype),
                preferred_element_type=jnp.float32) + b_ref[r0:r0 + C_in, :]
    h = jnp.maximum(h, 0.0)                                # (C, T)

    # Stage C: conv3, add to linear branch
    y = (y
         + jnp.dot(w_ref[r0 + C_pad:r0 + C_pad + F_out, :], h.astype(x.dtype),
                   preferred_element_type=jnp.float32)
         + b_ref[r0 + C_pad:r0 + C_pad + F_out, :])        # (F, T)

    o_ref[0] = y.astype(o_ref.dtype)


# ----------------------------------------------------------------------------
# Tile sizing: VMEM-budgeted, lane-aligned, megacore-friendly
# ----------------------------------------------------------------------------
_VMEM_BUDGET = 24 * 1024 * 1024   # per-step working-set target (safe on v7x 64 MiB)
_TILE_CAP = 32768                 # lanes


def _pick_hw_tile(hw: int, batch: int, per_lane_bytes: int,
                  budget_bytes: int = _VMEM_BUDGET, cap: int = _TILE_CAP) -> int:
    """Largest lane-aligned (mult. of 128) tile fitting the VMEM budget."""
    hw_pad = _round_up(hw, 128)
    t = min(cap, max(128, budget_bytes // max(per_lane_bytes, 1)))
    t = (t // 128) * 128
    t = min(t, hw_pad)
    # Megacore: keep >= 2 total grid steps when possible (v7x has 2 TCs).
    if batch * (-(-hw // t)) < 2 and hw > 128:
        t = min(t, _round_up((hw + 1) // 2, 128))
    if t >= hw:
        t = hw          # full extent is always a legal block shape
    return max(t, 1)


# ----------------------------------------------------------------------------
# Wrapper
# ----------------------------------------------------------------------------
def decoder_forward(x_nchw, lin_w, lin_b, nl_w1, nl_b1, nl_w2, nl_b2,
                    nl_w3, nl_b3):
    """x_nchw: (B, C, H, W); conv weights (out, in, 1, 1); biases (out,).
    Returns (B, F, H, W), matching PyTorch Decoder.forward."""
    B, C, H, W = x_nchw.shape
    F_out = lin_w.shape[0]
    HW = H * W
    dtype = x_nchw.dtype
    db = jnp.dtype(dtype).itemsize

    F_pad = _round_up(F_out, 8)
    C_pad = _round_up(C, 8)
    R = 2 * (F_pad + C_pad)

    # per-lane footprint: double-buffered x + out tiles, plus f32 intermediates
    per_lane = 2 * (C + F_out) * db + 4 * (F_pad + C_pad) * 4
    T = _pick_hw_tile(HW, B, per_lane)
    n_hw = pl.cdiv(HW, T)

    # Pack all weights into one array (rows zero-padded to 8-boundaries) and all
    # biases into another; cast weights once here (no in-kernel casts).
    W_all = jnp.zeros((R, C), dtype=dtype)
    W_all = W_all.at[0:F_out, :].set(lin_w.reshape(F_out, C).astype(dtype))
    W_all = W_all.at[F_pad:F_pad + C, :].set(nl_w1.reshape(C, C).astype(dtype))
    W_all = W_all.at[F_pad + C_pad:F_pad + C_pad + C, :].set(
        nl_w2.reshape(C, C).astype(dtype))
    W_all = W_all.at[F_pad + 2 * C_pad:F_pad + 2 * C_pad + F_out, :].set(
        nl_w3.reshape(F_out, C).astype(dtype))

    B_all = jnp.zeros((R, 1), dtype=jnp.float32)
    B_all = B_all.at[0:F_out, 0].set(lin_b.astype(jnp.float32))
    B_all = B_all.at[F_pad:F_pad + C, 0].set(nl_b1.astype(jnp.float32))
    B_all = B_all.at[F_pad + C_pad:F_pad + C_pad + C, 0].set(
        nl_b2.astype(jnp.float32))
    B_all = B_all.at[F_pad + 2 * C_pad:F_pad + 2 * C_pad + F_out, 0].set(
        nl_b3.astype(jnp.float32))

    # Free layout plumbing: reshape only, no transpose.
    x_flat = x_nchw.reshape(B, C, HW)

    est_bytes = per_lane * T + R * (C * db + 4) * 2
    vmem_limit = int(min(48 * 1024 * 1024,
                         max(32 * 1024 * 1024, est_bytes * 3 // 2)))

    kernel = functools.partial(_decoder_kernel, F_pad=F_pad, C_pad=C_pad,
                               F_out=F_out, C_in=C)

    out_flat = pl.pallas_call(
        kernel,
        out_shape=jax.ShapeDtypeStruct((B, F_out, HW), dtype),
        grid_spec=pltpu.PrefetchScalarGridSpec(
            num_scalar_prefetch=0,
            grid=(B, n_hw),
            in_specs=[
                pl.BlockSpec((1, C, T), lambda b, t: (b, 0, t)),
                pl.BlockSpec((R, C), lambda b, t: (0, 0)),   # packed weights
                pl.BlockSpec((R, 1), lambda b, t: (0, 0)),   # packed biases
            ],
            out_specs=pl.BlockSpec((1, F_out, T), lambda b, t: (b, 0, t)),
        ),
        compiler_params=pltpu.CompilerParams(
            dimension_semantics=("parallel", "parallel"),
            vmem_limit_bytes=vmem_limit,
        ),
    )(x_flat, W_all, B_all)

    return out_flat.reshape(B, F_out, H, W)


# ----------------------------------------------------------------------------
# Pure-JAX reference (sanity check)
# ----------------------------------------------------------------------------
def _reference(x, lin_w, lin_b, nl_w1, nl_b1, nl_w2, nl_b2, nl_w3, nl_b3):
    def conv1x1(inp, w, b):
        o = jnp.einsum("oc,bchw->bohw", w.reshape(w.shape[0], w.shape[1]), inp)
        return o + b[None, :, None, None]

    lin = conv1x1(x, lin_w, lin_b)
    h = jax.nn.relu(conv1x1(x, nl_w1, nl_b1))
    h = jax.nn.relu(conv1x1(h, nl_w2, nl_b2))
    nl = conv1x1(h, nl_w3, nl_b3)
    return lin + nl


if __name__ == "__main__":
    # Small shapes consistent with the module's forward pass.
    B, code_ch, feat_ch, H, W = 2, 4, 8, 16, 16

    key = jax.random.PRNGKey(0)
    ks = jax.random.split(key, 9)
    x = jax.random.normal(ks[0], (B, code_ch, H, W), dtype=jnp.float32)
    lin_w = 0.2 * jax.random.normal(ks[1], (feat_ch, code_ch, 1, 1), jnp.float32)
    lin_b = 0.1 * jax.random.normal(ks[2], (feat_ch,), jnp.float32)
    nl_w1 = 0.2 * jax.random.normal(ks[3], (code_ch, code_ch, 1, 1), jnp.float32)
    nl_b1 = 0.1 * jax.random.normal(ks[4], (code_ch,), jnp.float32)
    nl_w2 = 0.2 * jax.random.normal(ks[5], (code_ch, code_ch, 1, 1), jnp.float32)
    nl_b2 = 0.1 * jax.random.normal(ks[6], (code_ch,), jnp.float32)
    nl_w3 = 0.2 * jax.random.normal(ks[7], (feat_ch, code_ch, 1, 1), jnp.float32)
    nl_b3 = 0.1 * jax.random.normal(ks[8], (feat_ch,), jnp.float32)

    out = decoder_forward(x, lin_w, lin_b, nl_w1, nl_b1, nl_w2, nl_b2,
                          nl_w3, nl_b3)
    out = jax.block_until_ready(out)

    ref = _reference(x, lin_w, lin_b, nl_w1, nl_b1, nl_w2, nl_b2, nl_w3, nl_b3)
    assert out.shape == (B, feat_ch, H, W), out.shape
    assert jnp.allclose(out, ref, atol=1e-4, rtol=1e-4), \
        float(jnp.max(jnp.abs(out - ref)))

    print("KERNEL_OK")
</pallas_src>

<mosaic_0001>
module attributes {stable_mosaic.version = 11 : i64} {
  func.func @_decoder_kernel(%arg0: i32, %arg1: i32, %arg2: memref<1x4x256xf32, #tpu.memory_space<vmem>>, %arg3: memref<32x4xf32, #tpu.memory_space<vmem>>, %arg4: memref<32x1xf32, #tpu.memory_space<vmem>>, %arg5: memref<1x8x256xf32, #tpu.memory_space<vmem>>) attributes {dimension_semantics = [#tpu.dimension_semantics<parallel>, #tpu.dimension_semantics<parallel>], iteration_bounds = array<i64: 2, 1>, scalar_prefetch = 0 : i64, scratch_operands = 0 : i64, tpu.core_type = #tpu.core_type<tc>, window_params = [{transform_indices = @transform_0, window_bounds = array<i64: 1, 4, 256>}, {pipeline_mode = #tpu.pipeline_mode<synchronous>, transform_indices = @transform_1, window_bounds = array<i64: 32, 4>}, {pipeline_mode = #tpu.pipeline_mode<synchronous>, transform_indices = @transform_2, window_bounds = array<i64: 32, 1>}, {transform_indices = @transform_3, window_bounds = array<i64: 1, 8, 256>}]} {
    %c0 = arith.constant 0 : index
    %c0_0 = arith.constant 0 : index
    %c0_1 = arith.constant 0 : index
    %0 = vector.load %arg2[%c0, %c0_0, %c0_1] : memref<1x4x256xf32, #tpu.memory_space<vmem>>, vector<1x4x256xf32>
    %1 = vector.shape_cast %0 : vector<1x4x256xf32> to vector<4x256xf32>
    %c0_2 = arith.constant 0 : index
    %c0_3 = arith.constant 0 : index
    %2 = vector.load %arg3[%c0_2, %c0_3] : memref<32x4xf32, #tpu.memory_space<vmem>>, vector<16x4xf32>
    %cst = arith.constant dense<0.000000e+00> : vector<16x256xf32>
    %3 = tpu.matmul %2, %1, %cst {dimension_numbers = #tpu.dot_dimension_numbers<[1], [0], [0], [1], [0, 0, 1, 1], [], []>} : vector<16x4xf32>, vector<4x256xf32>, vector<16x256xf32> -> vector<16x256xf32>
    %c0_4 = arith.constant 0 : index
    %c0_5 = arith.constant 0 : index
    %4 = vector.load %arg4[%c0_4, %c0_5] : memref<32x1xf32, #tpu.memory_space<vmem>>, vector<16x1xf32>
    %5 = vector.broadcast %4 : vector<16x1xf32> to vector<16x256xf32>
    %6 = arith.addf %3, %5 : vector<16x256xf32>
    %7 = vector.extract_strided_slice %6 {offsets = [0, 0], sizes = [8, 256], strides = [1, 1]} : vector<16x256xf32> to vector<8x256xf32>
    %8 = vector.extract_strided_slice %6 {offsets = [8, 0], sizes = [4, 256], strides = [1, 1]} : vector<16x256xf32> to vector<4x256xf32>
    %cst_6 = arith.constant 0.000000e+00 : f32
    %9 = vector.broadcast %cst_6 : f32 to vector<4x256xf32>
    %10 = arith.maximumf %8, %9 : vector<4x256xf32>
    %c16 = arith.constant 16 : index
    %c0_7 = arith.constant 0 : index
    %11 = vector.load %arg3[%c16, %c0_7] : memref<32x4xf32, #tpu.memory_space<vmem>>, vector<4x4xf32>
    %cst_8 = arith.constant dense<0.000000e+00> : vector<4x256xf32>
    %12 = tpu.matmul %11, %10, %cst_8 {dimension_numbers = #tpu.dot_dimension_numbers<[1], [0], [0], [1], [0, 0, 1, 1], [], []>} : vector<4x4xf32>, vector<4x256xf32>, vector<4x256xf32> -> vector<4x256xf32>
    %c16_9 = arith.constant 16 : index
    %c0_10 = arith.constant 0 : index
    %13 = vector.load %arg4[%c16_9, %c0_10] : memref<32x1xf32, #tpu.memory_space<vmem>>, vector<4x1xf32>
    %14 = vector.broadcast %13 : vector<4x1xf32> to vector<4x256xf32>
    %15 = arith.addf %12, %14 : vector<4x256xf32>
    %cst_11 = arith.constant 0.000000e+00 : f32
    %16 = vector.broadcast %cst_11 : f32 to vector<4x256xf32>
    %17 = arith.maximumf %15, %16 : vector<4x256xf32>
    %c24 = arith.constant 24 : index
    %c0_12 = arith.constant 0 : index
    %18 = vector.load %arg3[%c24, %c0_12] : memref<32x4xf32, #tpu.memory_space<vmem>>, vector<8x4xf32>
    %cst_13 = arith.constant dense<0.000000e+00> : vector<8x256xf32>
    %19 = tpu.matmul %18, %17, %cst_13 {dimension_numbers = #tpu.dot_dimension_numbers<[1], [0], [0], [1], [0, 0, 1, 1], [], []>} : vector<8x4xf32>, vector<4x256xf32>, vector<8x256xf32> -> vector<8x256xf32>
    %20 = arith.addf %7, %19 : vector<8x256xf32>
    %c24_14 = arith.constant 24 : index
    %c0_15 = arith.constant 0 : index
    %21 = vector.load %arg4[%c24_14, %c0_15] : memref<32x1xf32, #tpu.memory_space<vmem>>, vector<8x1xf32>
    %22 = vector.broadcast %21 : vector<8x1xf32> to vector<8x256xf32>
    %23 = arith.addf %20, %22 : vector<8x256xf32>
    %c0_16 = arith.constant 0 : index
    %c0_17 = arith.constant 0 : index
    %c0_18 = arith.constant 0 : index
    %24 = vector.load %arg5[%c0_16, %c0_17, %c0_18] : memref<1x8x256xf32, #tpu.memory_space<vmem>>, vector<1x8x256xf32>
    %25 = vector.shape_cast %24 : vector<1x8x256xf32> to vector<8x256xf32>
    %26 = vector.shape_cast %23 : vector<8x256xf32> to vector<1x8x256xf32>
    tpu.vector_store %arg5[%c0_16, %c0_17, %c0_18], %26 {strides = array<i32>} : memref<1x8x256xf32, #tpu.memory_space<vmem>>, vector<1x8x256xf32>,
    return
  }
  func.func @transform_0(%arg0: i32, %arg1: i32) -> (i32, i32, i32) {
    %c0_i32 = arith.constant 0 : i32
    %c0_i32_0 = arith.constant 0 : i32
    return %arg0, %c0_i32, %arg1 : i32, i32, i32
  }
  func.func @transform_1(%arg0: i32, %arg1: i32) -> (i32, i32) {
    %c0_i32 = arith.constant 0 : i32
    %c0_i32_0 = arith.constant 0 : i32
    %c0_i32_1 = arith.constant 0 : i32
    return %c0_i32, %c0_i32_0 : i32, i32
  }
  func.func @transform_2(%arg0: i32, %arg1: i32) -> (i32, i32) {
    %c0_i32 = arith.constant 0 : i32
    %c0_i32_0 = arith.constant 0 : i32
    %c0_i32_1 = arith.constant 0 : i32
    return %c0_i32, %c0_i32_0 : i32, i32
  }
  func.func @transform_3(%arg0: i32, %arg1: i32) -> (i32, i32, i32) {
    %c0_i32 = arith.constant 0 : i32
    %c0_i32_0 = arith.constant 0 : i32
    return %arg0, %c0_i32, %arg1 : i32, i32, i32
  }
}

</mosaic_0001>

<bundles_post_ra>
// kernel: tpu_custom_call.1
= control target key start
LH: loop header
LB: loop body
LE: loop exit
PB: predicated region body
PF: predicated region fallthrough
CT: control target
= control target key end

     0   :  { %8 = vsyncpa [#allocation3], 0  ;;  %s902_s0 = inlined_call_operand.vmem [shape: f32[2,4,256], index: 0, kind: input, shape index: {}]   ;;  %s903_s1 = inlined_call_operand.vmem [shape: f32[32,4], index: 1, kind: input, shape index: {}]   ;;  %s904_s2 = inlined_call_operand.vmem [shape: f32[32,1], index: 2, kind: input, shape index: {}]   ;;  %s905_s3 = inlined_call_operand.hbm [shape: f32[2,8,256], index: 3, kind: output, shape index: {}]  }
   0x1   :  { %10 = vsyncpa [#allocation3 + $0x1], 0  ;;  %s769_s12 = smov 0   ;;  %s771_s13 = smov 0  }
   0x2   :  { %s773_s14 = smov 0   ;;  %s775_s15 = smov 0  }
   0x3   :  { %s777_s16 = smov 0   ;;  %s779_s17 = smov 0  }
   0x4 LB: > { %s583_s18 = sadd.s32 4294967295, %s744_s17   ;;  %s584_s19 = sadd.s32 4294967294, %s744_s17   ;;  %s744_s17 = sphi %s779_s17, %s16_s17   ;;  %s740_s16 = sphi %s777_s16, %s912_s16   ;;  %s736_s15 = sphi %s775_s15, %s911_s15   ;;  %s732_s14 = sphi %s773_s14, %s910_s14   ;;  %s728_s13 = sphi %s771_s13, %s909_s13   ;;  %s724_s12 = sphi %s769_s12, %s908_s12  }
   0x5   : > { %s28_s20 = sadd.s32 1, %s740_s16  ;;  %s107_s21 = sadd.s32 1, %s732_s14 }
   0x6   : > { %p30_p0 = scmp.ge.s32.totalorder %s28_s20, 2  ;;  %p117_p1 = scmp.ne.s32.totalorder %s732_s14, %s728_s13 }
   0x7   : > { %p118_p2 = scmp.eq.s32.totalorder %s583_s18, 1  ;;  %p123_p3 = scmp.ne.s32.totalorder %s728_s13, %s724_s12 }
   0x8   : > { %s914_s20 = smov (%p30_p0, %s28_s20), 0  ;;  %p124_p5 = scmp.eq.s32.totalorder %s584_s19, 1 }
   0x9   : > { %p809_p4 = por %p118_p2, %p117_p1  ;;  %s102_s23 = ssub.s32 %s740_s16, %s914_s20 }
   0xa   : > { %p587_p6 = scmp.ge.s32.totalorder %s744_s17, 1  ;;  %p105_p7 = scmp.eq.s32.totalorder %s102_s23, 0 }
   0xb   : > { %p816_p8 = por %p124_p5, %p123_p3  ;;  %p161_p9 = scmp.lt.s32.totalorder %s744_s17, 3 }
   0xc   : > { %s822_s25 = scalar_select %p105_p7, %s732_s14, %s107_s21  }
   0xd   : > { %p162_p10 = pnand %p587_p6, %p161_p9 }
   0xe   : > { %p190_p11 = scmp.lt.s32.totalorder (!%p162_p10), %s736_s15, 1  ;;  %s607_s5 = sshll.u32 (!%p162_p10), %s736_s15, 8 }
   0xf   : > { %165 = sbr.rel (%p162_p10) target bundleno = 647 (0x287), region = 32  ;;  %s505_s10 = scalar_lea.hbm (!%p162_p10), %s905_s3, %s607_s5 }
  0x10   : > { %s748_s19 = smov (!%p162_p10), [#allocation2]  }
  0x14   : > { %v746_v0 = vmov 0.0   ;;  %v203_v1 = vld [vmem:[%s904_s2] sm:$0xff]  ;;  %v204_v2 = vld [vmem:[%s904_s2 + $0x8] sm:$0xff]  ;;  %s191_s30 = scalar_select %p190_p11, %s736_s15, 1  ;;  %v747_v3 = vmov 0   ;;  %vm224_vm0 = vcmask 1043456  }
  0x15   : > { %293 = vmatprep.mubr.f32.mxu0 %v746_v0  ;;  %388 = vmatprep.mubr.f32.mxu1 %v746_v0  ;;  %v309_v4 = vld [vmem:[%s904_s2 + $0x10] sm:$0xf]  ;;  %v201_v7 = vld [vmem:[%s903_s1] sm:$0xff]  ;;  %vm217_vm1 = vcmask 31744   ;;  %v202_v8 = vld [vmem:[%s903_s1 + $0x8] sm:$0xff]  ;;  %s672_s15 = sshll.u32 %s748_s19, 4  ;;  %s673_s15 = int_to_ptr.vmem [resolvable:$false] %s672_s15 }
  0x16   : > { %666 = vset.pattern.permute.xlu1 %v747_v3  ;;  %665 = vset.pattern.permute.xlu0 %v747_v3  ;;  %s606_s4 = sshll.u32 %s191_s30, 3  ;;  %v308_v18 = vld [vmem:[%s903_s1 + $0x10] sm:$0xf]  ;;  %v480_v19 = vld [vmem:[%s904_s2 + $0x18] sm:$0xff]  ;;  %s186_s30 = sand.u32 1, %s728_s13  }
  0x17   : > { %207 = vperm.xlu1 %666, %v203_v1   ;;  %212 = vperm.xlu0 %665, %v204_v2   ;;  %s197_s9 = scalar_lea.vmem %s902_s0, %s606_s4  ;;  %v397_v27 = vld [vmem:[%s903_s1 + $0x18] sm:$0xff]  ;;  %s588_s4 = sshll.u32 %s186_s30, 4 }
  0x18   : > { %v200_v5 = vld [vmem:[%s197_s9] sm:$0xff]  ;;  %s188_s6 = scalar_lea.vmem [#allocation2], %s588_s4  ;;  %s491_s11 = scalar_lea.sflag [#allocation3], %s186_s30 }
  0x19   : > { %v216_v6 = vcombine.high %v200_v5, %v200_v5  ;;  %s507_s7 = sshll.u32 %s188_s6, 4  ;;  %s674_s21 = scalar_lea.vmem %s673_s15, 512  ;;  %s508_s7 = int_to_ptr.vmem [resolvable:$true] %s507_s7 }
  0x1a   : > { %s668_s18 = scalar_lea.vmem %s508_s7, 256  ;;  %p675_p1 = scmp.lt.s32.totalorder %s508_s7, %s673_s15 }
  0x1b   : > { %312 = vperm.xlu0 %665, %v309_v4   ;;  %591 = vmatprep.subr.msk.mxu0 %vm224_vm0, %v216_v6  ;;  %p669_p12 = scmp.ne.s32.totalorder %s508_s7, %s668_s18  ;;  %p676_p2 = scmp.lt.s32.totalorder %s674_s21, %s668_s18 }
  0x1c   : > { %592 = vmatpush1.msk.msra.mxu0 %vm224_vm0, %v200_v5  ;;  %483 = vperm.xlu1 %666, %v480_v19  }
  0x1d   : > { %593 = vmatmul.mubr.msk.f32.vlgmr.msra.gmra.mxu0 %vm217_vm1, %v201_v7  ;;  %p670_p13 = pnand %p669_p12, %p809_p4  ;;  %p677_p3 = por %p676_p2, %p675_p1 }
  0x1e   : > { %299 = vmatprep.mubr.f32.mxu0 %v746_v0 }
  0x1f   : > { %p671_p0 = pneg %p670_p13 }
  0x21   : > { %594 = vmatmul.mubr.msk.f32.gmra.mxu0 %vm217_vm1, %v202_v8  ;;  %p678_p5 = pnand %p677_p3, %p671_p0 }
  0x92   : > { %v213_v12 = vpop.permute.xlu0 %212  ;;  %v208_v28 = vpop.permute.xlu1 %207 }
  0x96   : > { %v313_v21 = vpop.permute.xlu0 %312 }
  0x97   : > { %v484_v33 = vpop.permute.xlu1 %483 }
  0xdd   : > { %v295_v9 = vpop.f32.mrf.mxu0 }
  0xde   : > { %v296_v29 = vadd.f32 %v295_v9, %v208_v28 }
  0xdf   : > { %v297_v10 = vpop.f32.mrf.mxu0 }
  0xe0   : > { %v298_v31 = vadd.f32 %v297_v10, %v208_v28 }
  0xe1   : > { %v301_v11 = vpop.f32.mrf.mxu0 }
  0xe2   : > { %v302_v13 = vadd.f32 %v301_v11, %v213_v12 }
  0xe3   : > { %v303_v14 = vpop.f32.mrf.mxu0 }
  0xe4   : > { %v304_v15 = vadd.f32 %v303_v14, %v213_v12  ;;  %v306_v17 = vmax.f32 %v302_v13, 0.0 }
  0xe6   : > { %v307_v16 = vmax.f32 %v304_v15, 0.0 }
  0xe8   : > { %595 = vmatprep.subr.msk.mxu1 %vm224_vm0, %v307_v16 }
  0xe9   : > { %596 = vmatpush1.msk.msra.mxu1 %vm224_vm0, %v306_v17 }
  0xea   : > { %597 = vmatmul.mubr.msk.f32.vlgmr.msra.gmra.mxu1 %vm217_vm1, %v308_v18 }
  0xeb   : > { %471 = vmatprep.mubr.f32.mxu1 %v746_v0 }
 0x1aa   : > { %v390_v20 = vpop.f32.mrf.mxu1 }
 0x1ab   : > { %v391_v22 = vadd.f32 %v390_v20, %v313_v21 }
 0x1ac   : > { %v392_v23 = vpop.f32.mrf.mxu1 }
 0x1ad   : > { %v393_v24 = vadd.f32 %v392_v23, %v313_v21  ;;  %v395_v26 = vmax.f32 %v391_v22, 0.0 }
 0x1af   : > { %v396_v25 = vmax.f32 %v393_v24, 0.0 }
 0x1b1   : > { %598 = vmatprep.subr.msk.mxu1 %vm224_vm0, %v396_v25 }
 0x1b2   : > { %599 = vmatpush1.msk.msra.mxu1 %vm224_vm0, %v395_v26 }
 0x1b3   : > { %600 = vmatmul.mubr.msk.f32.vlgmr.msra.gmra.mxu1 %vm217_vm1, %v397_v27 }
 0x273   : > { %v473_v30 = vpop.f32.mrf.mxu1 }
 0x274   : > { %v478_v32 = vadd.f32 %v473_v30, %v296_v29 }
 0x275   : > { %v475_v34 = vpop.f32.mrf.mxu1 }
 0x276   : > { %v486_v35 = vadd.f32 %v484_v33, %v478_v32  ;;  %v479_v36 = vadd.f32 %v475_v34, %v298_v31 }
 0x278   : > { %488 = vst [vmem:[%s188_s6] sm:$0xff] %v486_v35  ;;  %v487_v37 = vadd.f32 %v484_v33, %v479_v36 }
 0x27a   : > { %489 = vst [vmem:[%s188_s6 + $0x8] sm:$0xff] %v487_v37 }
 0x27b   : > { %681 = shalt.err (!%p678_p5)
}
 0x27c   : > { %s682_s23 = scalar_lea.hbm %s505_s10, 256  ;;  %s686_s28 = scalar_lea.hbm %s905_s3, 512 }
 0x27d   : > { %p683_p6 = scmp.ne.s32.totalorder %s505_s10, %s682_s23  ;;  %p687_p10 = scmp.lt.s32.totalorder %s505_s10, %s905_s3 }
 0x27e   : > { %p688_p11 = scmp.lt.s32.totalorder %s686_s28, %s682_s23 }
 0x27f   : > { %p684_p7 = pnand %p683_p6, %p809_p4 }
 0x280   : > { %p689_p12 = por %p688_p11, %p687_p10 }
 0x281   : > { %p685_p9 = pneg %p684_p7 }
 0x283   : > { %p690_p13 = pnand %p689_p12, %p685_p9 }
 0x285   : > { %693 = shalt.err (!%p690_p13)
}
 0x286   : > { %608 = dma.vmem_to_hbm [thread:$0]  (%p809_p4), %s508_s7, 256, %s505_s10, %s491_s11  }
 0x287 PF: > { %p614_p0 = scmp.ge.s32.totalorder %s744_s17, 2  ;;  %s519_s4 = sand.u32 1, %s724_s12  }
 0x288   : > { %s520_s5 = scalar_lea.sflag [#allocation3], %s519_s4 }
 0x289   : > { %p611_p1 = pnand %p614_p0, %p816_p8 }
 0x28b   : > { %p612_p2 = pneg %p611_p1 }
 0x28d   : > { %719 = dma.done.wait (%p612_p2), %s520_s5, 256  }
 0x28e   : > { %721 = vsyncadd (%p612_p2), %s520_s5, 4294967040  ;;  %s16_s17 = sadd.s32 1, %s744_s17   ;;  %s908_s12 = smov %s728_s13 }
 0x28f   : > { %p13_p3 = scmp.ge.s32.totalorder %s16_s17, 4   ;;  %s909_s13 = smov %s732_s14 }
 0x290   : > { %s910_s14 = smov %s822_s25  ;;  %s911_s15 = smov %s740_s16 }
 0x291   : > { %s912_s16 = smov %s914_s20  ;;  %15 = sbr.rel (!%p13_p3) target bundleno = 4 (0x4), region = 67 }
 0x296   :  { %525 = vsyncpa [#allocation3], 1 }
 0x297   :  { %527 = vsyncpa [#allocation3 + $0x1], 1 }

</bundles_post_ra>
